<compile_context>
chip_gen: v5e
topology: v5e:2x2
jax: 0.10.0
libtpu: 0.0.40
codegen_flags: <defaults>
</compile_context>

<pallas_src>
import jax
import jax.numpy as jnp
from jax.experimental import pallas as pl
from jax.experimental.pallas import tpu as pltpu

NEG_INF = -1e30
LANE = 128
SUB = 8
HIGHEST = jax.lax.Precision.HIGHEST


def _round_up(a, b):
    return (a + b - 1) // b * b


def _leaky(x, slope=0.2):
    # leaky_relu(x, s) == (1+s)/2 * x + (1-s)/2 * |x|   (avoids a select)
    return 0.5 * (1.0 + slope) * x + 0.5 * (1.0 - slope) * jnp.abs(x)


# --------------------------------------------------------------------------- #
# Kernel 1: fused source/target projection                                     #
# --------------------------------------------------------------------------- #
def _proj_kernel(x_ref, w_ref, b_ref, o_ref):
    o_ref[...] = (jnp.dot(x_ref[...], w_ref[...],
                          preferred_element_type=jnp.float32,
                          precision=HIGHEST)
                  + b_ref[...]).astype(o_ref.dtype)


# --------------------------------------------------------------------------- #
# Kernel 2: tiled GATv2 attention + aggregation (online softmax over src)      #
# --------------------------------------------------------------------------- #
def _gatv2_attn_kernel(adj_ref, xr_ref, xl_ref, att_ref, bias_ref, o_ref,
                       m_sc, l_sc, acc_sc):
    k = pl.program_id(1)

    @pl.when(k == 0)
    def _():
        m_sc[...] = jnp.full_like(m_sc, NEG_INF)
        l_sc[...] = jnp.zeros_like(l_sc)
        acc_sc[...] = jnp.zeros_like(acc_sc)

    xr = xr_ref[...]                       # [TM, C]  lin_r (target / dst) projections
    xl = xl_ref[...]                       # [TN, C]  lin_l (source / src) projections
    adj = adj_ref[...]                     # [TM, TN] adj[dst, src]

    # GATv2 logits for this (dst, src) tile only — never build [N, N, C].
    s = xr[:, None, :] + xl[None, :, :]                          # [TM, TN, C]
    s = _leaky(s)                                                # internal leaky_relu(0.2)
    logits = jnp.sum(s * att_ref[...][None, :, :], axis=-1)      # [TM, TN]
    logits = jnp.where(adj > 0, logits, NEG_INF)

    # Online softmax over incoming edges (source axis).
    m_prev = m_sc[...]
    m_new = jnp.maximum(m_prev, jnp.max(logits, axis=1, keepdims=True))
    a = jnp.exp(m_prev - m_new)
    p = jnp.exp(logits - m_new)            # masked entries underflow to exactly 0
    l_sc[...] = a * l_sc[...] + jnp.sum(p, axis=1, keepdims=True)
    acc_sc[...] = a * acc_sc[...] + jnp.dot(p, xl,
                                            preferred_element_type=jnp.float32,
                                            precision=HIGHEST)
    m_sc[...] = m_new

    @pl.when(k == pl.num_programs(1) - 1)
    def _():
        out = acc_sc[...] / l_sc[...] + bias_ref[...]            # exact normalization
        o_ref[...] = _leaky(out).astype(o_ref.dtype)             # F.leaky_relu(., 0.2)


# --------------------------------------------------------------------------- #
# Kernel 3: BatchNorm (training-mode batch statistics, eps = 1e-5)             #
# --------------------------------------------------------------------------- #
def _bn_kernel(h_ref, gamma_ref, beta_ref, o_ref):
    h = h_ref[...]
    mean = jnp.mean(h, axis=0, keepdims=True)
    var = jnp.mean((h - mean) ** 2, axis=0, keepdims=True)
    o_ref[...] = ((h - mean) * jax.lax.rsqrt(var + 1e-5) * gamma_ref[...]
                  + beta_ref[...]).astype(o_ref.dtype)
    # TODO(synk): nn.Dropout(0.2) is stochastic; applied as identity (eval semantics).


# --------------------------------------------------------------------------- #
# Wrapper                                                                      #
# --------------------------------------------------------------------------- #
def gatv2_layer(x, adj, params):
    n, f_in = x.shape
    c = params["wl"].shape[1]
    c_pad = _round_up(c, LANE)
    f32 = jnp.float32

    # Tile sizes: dst tiles TM (parallel), src tiles TN (arbitrary / reduction).
    if n <= LANE:
        n_pad = _round_up(n, SUB)
        tm = tn = n_pad
    else:
        n_pad = _round_up(n, LANE)
        tm, tn = 64, LANE

    # --- wrapper-side packing / padding (layout plumbing, not compute) -------
    x_p = jnp.zeros((n_pad, f_in), f32).at[:n].set(x.astype(f32))
    adj_p = jnp.zeros((n_pad, n_pad), f32).at[:n, :n].set(adj.astype(f32))

    def pad_c(v, fill=0.0):
        return jnp.full((1, c_pad), fill, f32).at[:, :c].set(v.reshape(1, c).astype(f32))

    w_fused = jnp.zeros((f_in, 2 * c_pad), f32)
    w_fused = w_fused.at[:, :c].set(params["wl"].astype(f32))
    w_fused = w_fused.at[:, c_pad:c_pad + c].set(params["wr"].astype(f32))
    b_fused = jnp.zeros((1, 2 * c_pad), f32)
    b_fused = b_fused.at[:, :c].set(params["bl"].reshape(1, c).astype(f32))
    b_fused = b_fused.at[:, c_pad:c_pad + c].set(params["br"].reshape(1, c).astype(f32))
    att = pad_c(params["att"])
    bias = pad_c(params["bias"])
    gamma = pad_c(params["gamma"], fill=1.0)
    beta = pad_c(params["beta"])

    # --- 1) fused lin_l / lin_r projection ------------------------------------
    tp = min(LANE, n_pad)
    xlr = pl.pallas_call(
        _proj_kernel,
        out_shape=jax.ShapeDtypeStruct((n_pad, 2 * c_pad), f32),
        grid=(n_pad // tp,),
        in_specs=[pl.BlockSpec((tp, f_in), lambda i: (i, 0)),
                  pl.BlockSpec((f_in, 2 * c_pad), lambda i: (0, 0)),
                  pl.BlockSpec((1, 2 * c_pad), lambda i: (0, 0))],
        out_specs=pl.BlockSpec((tp, 2 * c_pad), lambda i: (i, 0)),
        compiler_params=pltpu.CompilerParams(dimension_semantics=("parallel",)),
    )(x_p, w_fused, b_fused)

    # --- 2) tiled attention + aggregation -------------------------------------
    cost = pl.CostEstimate(
        flops=int(8 * n_pad * n_pad * c_pad + 4 * n_pad * f_in * c_pad),
        transcendentals=int(n_pad * n_pad),
        bytes_accessed=int(4 * (n_pad * n_pad + 2 * n_pad * 2 * c_pad + n_pad * c_pad)),
    )
    h = pl.pallas_call(
        _gatv2_attn_kernel,
        out_shape=jax.ShapeDtypeStruct((n_pad, c_pad), f32),
        grid=(n_pad // tm, n_pad // tn),
        in_specs=[pl.BlockSpec((tm, tn), lambda i, k: (i, k)),       # adj[dst, src]
                  pl.BlockSpec((tm, c_pad), lambda i, k: (i, 1)),    # x_r: right half of xlr
                  pl.BlockSpec((tn, c_pad), lambda i, k: (k, 0)),    # x_l: left half of xlr
                  pl.BlockSpec((1, c_pad), lambda i, k: (0, 0)),     # att
                  pl.BlockSpec((1, c_pad), lambda i, k: (0, 0))],    # conv bias
        out_specs=pl.BlockSpec((tm, c_pad), lambda i, k: (i, 0)),
        scratch_shapes=[pltpu.VMEM((tm, 1), f32),        # running max m
                        pltpu.VMEM((tm, 1), f32),        # running denom l
                        pltpu.VMEM((tm, c_pad), f32)],   # running numerator acc
        compiler_params=pltpu.CompilerParams(
            dimension_semantics=("parallel", "arbitrary"),
            vmem_limit_bytes=48 * 1024 * 1024),          # fits v7x's 64 MiB VMEM
        cost_estimate=cost,
    )(adj_p, xlr, xlr, att, bias)

    # --- 3) BatchNorm over the real nodes -------------------------------------
    out = pl.pallas_call(
        _bn_kernel,
        out_shape=jax.ShapeDtypeStruct((n, c_pad), f32),
        in_specs=[pl.BlockSpec(memory_space=pltpu.MemorySpace.VMEM)] * 3,
        out_specs=pl.BlockSpec(memory_space=pltpu.MemorySpace.VMEM),
    )(h[:n], gamma, beta)

    return out[:, :c]


# --------------------------------------------------------------------------- #
# Pure-JAX reference with identical semantics (for correctness check)          #
# --------------------------------------------------------------------------- #
def gatv2_layer_ref(x, adj, p):
    xl = jnp.dot(x, p["wl"], precision=HIGHEST) + p["bl"]
    xr = jnp.dot(x, p["wr"], precision=HIGHEST) + p["br"]
    s = xl[None, :, :] + xr[:, None, :]
    s = jnp.where(s >= 0, s, 0.2 * s)
    logits = jnp.sum(s * p["att"][None, :, :], axis=-1)
    logits = jnp.where(adj > 0, logits, NEG_INF)
    e = jnp.exp(logits - logits.max(axis=1, keepdims=True)) * adj
    alpha = e / e.sum(axis=1, keepdims=True)
    out = jnp.dot(alpha, xl, precision=HIGHEST) + p["bias"]
    out = jnp.where(out >= 0, out, 0.2 * out)
    mean = out.mean(axis=0, keepdims=True)
    var = ((out - mean) ** 2).mean(axis=0, keepdims=True)
    return (out - mean) * jax.lax.rsqrt(var + 1e-5) * p["gamma"] + p["beta"]


if __name__ == "__main__":
    N, F_IN, F_OUT = 200, 8, 32          # N > 128 so the (dst, src) grid is really tiled
    key = jax.random.PRNGKey(0)
    kx, ke, kwl, kwr, katt, kb = jax.random.split(key, 6)

    # Node features.
    x = jax.random.normal(kx, (N, F_IN), jnp.float32)

    # Directed graph: ring edges + random extra edges; edge_index is [2, E]
    # in the PyG convention (row 0 = source, row 1 = target).
    ring_src = jnp.arange(N, dtype=jnp.int32)
    ring_dst = (ring_src + 1) % N
    extra_src = jax.random.randint(ke, (4 * N,), 0, N, dtype=jnp.int32)
    extra_dst = jax.random.randint(jax.random.fold_in(ke, 1), (4 * N,), 0, N, dtype=jnp.int32)
    edge_index = jnp.stack([jnp.concatenate([ring_src, extra_src]),
                            jnp.concatenate([ring_dst, extra_dst])])          # [2, 5N]

    # Glue: sparse edge_index -> dense adjacency mask adj[dst, src];
    # GATv2Conv adds self loops by default.
    adj = jnp.zeros((N, N), jnp.float32).at[edge_index[1], edge_index[0]].set(1.0)
    adj = jnp.maximum(adj, jnp.eye(N, dtype=jnp.float32))

    # Deterministic (glorot-style) parameter init, shapes per GATv2Conv/BatchNorm.
    def glorot(k, shape):
        return jax.random.normal(k, shape, jnp.float32) * (2.0 / (shape[0] + shape[-1])) ** 0.5

    kb1, kb2, kb3, kb4, kb5 = jax.random.split(kb, 5)
    params = dict(
        wl=glorot(kwl, (F_IN, F_OUT)),                                    # lin_l.weight.T
        bl=0.1 * jax.random.normal(kb1, (1, F_OUT), jnp.float32),         # lin_l.bias
        wr=glorot(kwr, (F_IN, F_OUT)),                                    # lin_r.weight.T
        br=0.1 * jax.random.normal(kb2, (1, F_OUT), jnp.float32),         # lin_r.bias
        att=glorot(katt, (1, F_OUT)),                                     # att (heads=1)
        bias=0.1 * jax.random.normal(kb3, (1, F_OUT), jnp.float32),       # GATv2Conv.bias
        gamma=1.0 + 0.1 * jax.random.normal(kb4, (1, F_OUT), jnp.float32),  # BatchNorm.weight
        beta=0.1 * jax.random.normal(kb5, (1, F_OUT), jnp.float32),       # BatchNorm.bias
    )

    out = jax.block_until_ready(gatv2_layer(x, adj, params))
    ref = gatv2_layer_ref(x, adj, params)

    assert out.shape == (N, F_OUT), out.shape
    err = float(jnp.abs(out - ref).max())
    # Tolerance is on unit-variance BatchNorm outputs; 2e-2 absorbs residual MXU
    # pass-precision differences while still catching any logic error (O(0.1-1)).
    assert bool(jnp.allclose(out, ref, atol=2e-2, rtol=2e-2)), err
    print("KERNEL_OK")
</pallas_src>

<mosaic_0001>
module attributes {stable_mosaic.version = 11 : i64} {
  func.func @_proj_kernel(%arg0: i32, %arg1: memref<128x8xf32, #tpu.memory_space<vmem>>, %arg2: memref<8x256xf32, #tpu.memory_space<vmem>>, %arg3: memref<1x256xf32, #tpu.memory_space<vmem>>, %arg4: memref<128x256xf32, #tpu.memory_space<vmem>>) attributes {dimension_semantics = [#tpu.dimension_semantics<parallel>], iteration_bounds = array<i64: 2>, scalar_prefetch = 0 : i64, scratch_operands = 0 : i64, tpu.core_type = #tpu.core_type<tc>, window_params = [{transform_indices = @transform_0, window_bounds = array<i64: 128, 8>}, {pipeline_mode = #tpu.pipeline_mode<synchronous>, transform_indices = @transform_1, window_bounds = array<i64: 8, 256>}, {pipeline_mode = #tpu.pipeline_mode<synchronous>, transform_indices = @transform_2, window_bounds = array<i64: 1, 256>}, {transform_indices = @transform_3, window_bounds = array<i64: 128, 256>}]} {
    %c0 = arith.constant 0 : index
    %c0_0 = arith.constant 0 : index
    %0 = vector.load %arg1[%c0, %c0_0] : memref<128x8xf32, #tpu.memory_space<vmem>>, vector<128x8xf32>
    %c0_1 = arith.constant 0 : index
    %c0_2 = arith.constant 0 : index
    %1 = vector.load %arg2[%c0_1, %c0_2] : memref<8x256xf32, #tpu.memory_space<vmem>>, vector<8x256xf32>
    %cst = arith.constant dense<0.000000e+00> : vector<128x256xf32>
    %2 = tpu.matmul %0, %1, %cst {dimension_numbers = #tpu.dot_dimension_numbers<[1], [0], [0], [1], [0, 0, 1, 1], [], []>, precision = #tpu.contract_precision<fp32>} : vector<128x8xf32>, vector<8x256xf32>, vector<128x256xf32> -> vector<128x256xf32>
    %c0_3 = arith.constant 0 : index
    %c0_4 = arith.constant 0 : index
    %3 = vector.load %arg3[%c0_3, %c0_4] : memref<1x256xf32, #tpu.memory_space<vmem>>, vector<1x256xf32>
    %4 = vector.broadcast %3 : vector<1x256xf32> to vector<128x256xf32>
    %5 = arith.addf %2, %4 : vector<128x256xf32>
    %c0_5 = arith.constant 0 : index
    %c0_6 = arith.constant 0 : index
    %6 = vector.load %arg4[%c0_5, %c0_6] : memref<128x256xf32, #tpu.memory_space<vmem>>, vector<128x256xf32>
    tpu.vector_store %arg4[%c0_5, %c0_6], %5 {strides = array<i32>} : memref<128x256xf32, #tpu.memory_space<vmem>>, vector<128x256xf32>,
    return
  }
  func.func @transform_0(%arg0: i32) -> (i32, i32) {
    %c0_i32 = arith.constant 0 : i32
    %c0_i32_0 = arith.constant 0 : i32
    return %arg0, %c0_i32 : i32, i32
  }
  func.func @transform_1(%arg0: i32) -> (i32, i32) {
    %c0_i32 = arith.constant 0 : i32
    %c0_i32_0 = arith.constant 0 : i32
    %c0_i32_1 = arith.constant 0 : i32
    return %c0_i32, %c0_i32_0 : i32, i32
  }
  func.func @transform_2(%arg0: i32) -> (i32, i32) {
    %c0_i32 = arith.constant 0 : i32
    %c0_i32_0 = arith.constant 0 : i32
    %c0_i32_1 = arith.constant 0 : i32
    return %c0_i32, %c0_i32_0 : i32, i32
  }
  func.func @transform_3(%arg0: i32) -> (i32, i32) {
    %c0_i32 = arith.constant 0 : i32
    %c0_i32_0 = arith.constant 0 : i32
    return %arg0, %c0_i32 : i32, i32
  }
}

</mosaic_0001>

<bundles_post_ra>
// kernel: tpu_custom_call.1
= control target key start
LH: loop header
LB: loop body
LE: loop exit
PB: predicated region body
PF: predicated region fallthrough
CT: control target
= control target key end

     0   :  { %8 = vsyncpa [#allocation3], 0  ;;  %s2406_s0 = inlined_call_operand.vmem [shape: f32[256,8], index: 0, kind: input, shape index: {}]   ;;  %s2407_s1 = inlined_call_operand.vmem [shape: f32[8,256], index: 1, kind: input, shape index: {}]   ;;  %s2408_s2 = inlined_call_operand.vmem [shape: f32[1,256], index: 2, kind: input, shape index: {}]   ;;  %s2409_s3 = inlined_call_operand.hbm [shape: f32[256,256], index: 3, kind: output, shape index: {}]  }
   0x1   :  { %10 = vsyncpa [#allocation3 + $0x1], 0  ;;  %s1720_s12 = smov 0   ;;  %s1722_s13 = smov 0  }
   0x2   :  { %s1724_s14 = smov 0   ;;  %s1726_s15 = smov 0  }
   0x3 LB: > { %s1741_s16 = sadd.s32 4294967295, %s1696_s15   ;;  %s1578_s17 = sadd.s32 4294967294, %s1696_s15   ;;  %s1696_s15 = sphi %s1726_s15, %s2460_s15   ;;  %s1692_s14 = sphi %s1724_s14, %s2459_s14   ;;  %s1688_s13 = sphi %s1722_s13, %s2458_s13   ;;  %s1684_s12 = sphi %s1720_s12, %s2457_s12  }
   0x4   : > { %s1745_s18 = sadd.s32 1, %s1696_s15   ;;  %s91_s19 = sadd.s32 1, %s1692_s14 }
   0x5   : > { %s88_s20 = ssub.s32 %s1696_s15, %s1745_s18  ;;  %p101_p0 = scmp.ne.s32.totalorder %s1692_s14, %s1688_s13 }
   0x6   : > { %p89_p1 = scmp.eq.s32.totalorder %s88_s20, 0  ;;  %p102_p2 = scmp.eq.s32.totalorder %s1741_s16, 1 }
   0x7   : > { %p107_p3 = scmp.ne.s32.totalorder %s1688_s13, %s1684_s12  ;;  %p108_p4 = scmp.eq.s32.totalorder %s1578_s17, 1 }
   0x8   : > { %s1756_s21 = scalar_select %p89_p1, %s1692_s14, %s91_s19  }
   0x9   : > { %p1758_p5 = por %p102_p2, %p101_p0  ;;  %p1762_p6 = por %p108_p4, %p107_p3 }
   0xa   : > { %p1581_p7 = scmp.ge.s32.totalorder %s1696_s15, 1  ;;  %p141_p8 = scmp.lt.s32.totalorder %s1696_s15, 3 }
   0xc   : > { %p142_p9 = pnand %p1581_p7, %p141_p8 }
   0xe   : > { %145 = sbr.rel (%p142_p9) target bundleno = 551 (0x227), region = 32 }
  0x13   : > { %v188_v0 = vld [vmem:[%s2407_s1] sm:$0xff]  ;;  %s1583_s26 = sshll.u32 %s1741_s16, 4  ;;  %v189_v1 = vld [vmem:[%s2407_s1 + $0x8] sm:$0xff]  ;;  %vm196_vm0 = vcmask 64512   ;;  %s162_s8 = sand.u32 1, %s1688_s13  }
  0x14   : > { %v260_v2 = vand.u32 4294901760, %v188_v0  ;;  %p166_p10 = scmp.lt.s32.totalorder %s1583_s26, 31  ;;  %v871_v3 = vand.u32 4294901760, %v189_v1  ;;  %s1582_s9 = sshll.u32 %s162_s8, 8 }
  0x15   : > { %s2203_s10 = scalar_lea.vmem [#allocation2], %s1582_s9  ;;  %s1592_s11 = sshll.u32 %s1741_s16, 8 }
  0x16   : > { %v407_v4 = vsub.f32 %v188_v0, %v260_v2  ;;  %s2462_s26 = smov (!%p166_p10, %s1583_s26), 31  ;;  %261 = vmatpush.msra.mxu0 %v260_v2  ;;  %592 = vmatpush.msra.mxu3 %v260_v2  ;;  %v1018_v5 = vsub.f32 %v189_v1, %v871_v3  ;;  %s1512_s20 = scalar_lea.hbm %s2409_s3, %s1592_s11 }
  0x17   : > { %s1584_s29 = sshll.u32 %s2462_s26, 3  ;;  %s1513_s24 = sshll.u32 %s2203_s10, 4  ;;  %s1514_s24 = int_to_ptr.vmem [resolvable:$true] %s1513_s24 }
  0x18   : > { %494 = vmatpush.msra.mxu2 %v407_v4  ;;  %v408_v6 = vand.u32 4294901760, %v407_v4  ;;  %v1019_v7 = vand.u32 4294901760, %v1018_v5  ;;  %s1778_s5 = scalar_lea.vmem %s2406_s0, %s1584_s29  ;;  %s1515_s25 = sshll.u32 %s1512_s20, 4  ;;  %s1516_s25 = int_to_ptr.hbm [resolvable:$true] %s1515_s25 }
  0x19   : > { %v172_v8 = vld [vmem:[%s1778_s5] sm:$0xff]  ;;  %v173_v11 = vld [vmem:[%s1778_s5 + $0x8] sm:$0xff]  ;;  %v174_v18 = vld [vmem:[%s1778_s5 + $0x10] sm:$0xff]  ;;  %s1500_s16 = scalar_lea.sflag [#allocation3], %s162_s8  ;;  %s1648_s26 = sshra.s32 %s1516_s25, 4  ;;  %s1649_s26 = int_to_ptr.hbm [resolvable:$true] %s1648_s26 }
  0x1a   : > { %872 = vmatpush.msrb.mxu2 %v871_v3  ;;  %708 = vmatpush.msrb.mxu0 %v408_v6  ;;  %v1020_v9 = vsub.f32 %v1018_v5, %v1019_v7  ;;  %v409_v10 = vsub.f32 %v407_v4, %v408_v6  ;;  %v198_v12 = vsel %vm196_vm0, %v172_v8, 0  ;;  %v201_v13 = vsel %vm196_vm0, %v173_v11, 0  ;;  %v175_v27 = vld [vmem:[%s1778_s5 + $0x18] sm:$0xff]  ;;  %v176_v34 = vld [vmem:[%s1778_s5 + $0x20] sm:$0xff]  ;;  %v177_v41 = vld [vmem:[%s1778_s5 + $0x28] sm:$0xff]  ;;  %s1650_s27 = scalar_lea.hbm %s1649_s26, 256  ;;  %p1655_p0 = scmp.lt.s32.totalorder %s1649_s26, %s2409_s3 }
  0x1b   : > { %v1784_v14 = vand.u32 4294901760, %v198_v12  ;;  %v1786_v17 = vand.u32 4294901760, %v201_v13  ;;  %v204_v21 = vsel %vm196_vm0, %v174_v18, 0  ;;  %v207_v30 = vsel %vm196_vm0, %v175_v27, 0  ;;  %v178_v48 = vld [vmem:[%s1778_s5 + $0x30] sm:$0xff]  ;;  %v179_v55 = vld [vmem:[%s1778_s5 + $0x38] sm:$0xff]  ;;  %p1651_p11 = scmp.ne.s32.totalorder %s1649_s26, %s1650_s27 }
  0x1c   : > { %v1021_v15 = vand.u32 4294901760, %v1020_v9  ;;  %v410_v16 = vand.u32 4294901760, %v409_v10  ;;  %v1807_v25 = vand.u32 4294901760, %v204_v21  ;;  %v1827_v33 = vand.u32 4294901760, %v207_v30  ;;  %v180_v62 = vld [vmem:[%s1778_s5 + $0x40] sm:$0xff]  ;;  %v183_v27 = vld [vmem:[%s1778_s5 + $0x58] sm:$0xff] }
  0x1d   : > { %v1790_v19 = vsub.f32 %v198_v12, %v1784_v14  ;;  %v1793_v20 = vsub.f32 %v201_v13, %v1786_v17  ;;  %v210_v37 = vsel %vm196_vm0, %v176_v34, 0  ;;  %v213_v44 = vsel %vm196_vm0, %v177_v41, 0  ;;  %v182_v12 = vld [vmem:[%s1778_s5 + $0x50] sm:$0xff]  ;;  %p1652_p12 = pnand %p1651_p11, %p1758_p5  ;;  %s1654_s30 = scalar_lea.hbm %s2409_s3, 512 }
  0x1e   : > { %1022 = vmatpush.msrb.mxu3 %v1021_v15  ;;  %411 = vmatpush.msra.mxu1 %v410_v16  ;;  %v1816_v29 = vsub.f32 %v204_v21, %v1807_v25  ;;  %v1834_v36 = vsub.f32 %v207_v30, %v1827_v33  ;;  %v1845_v40 = vand.u32 4294901760, %v210_v37  ;;  %v1863_v47 = vand.u32 4294901760, %v213_v44  ;;  %p1656_p1 = scmp.lt.s32.totalorder %s1654_s30, %s1650_s27 }
  0x1f   : > { %413 = vmatmul.f32.vlgmr.msra.gmra.mxu1 %v1784_v14  ;;  %497 = vmatmul.f32.vlgmr.msra.gmra.mxu2 %v1790_v19  ;;  %v1799_v22 = vand.u32 4294901760, %v1790_v19  ;;  %v1805_v24 = vand.u32 4294901760, %v1793_v20  ;;  %v216_v51 = vsel %vm196_vm0, %v178_v48, 0  ;;  %v219_v58 = vsel %vm196_vm0, %v179_v55, 0  ;;  %p1653_p13 = pneg %p1652_p12 }
  0x20   : > { %790 = vmatpush.msrb.mxu1 %v260_v2  ;;  %1319 = vmatpush.msra.mxu2 %v1019_v7  ;;  %v1825_v32 = vand.u32 4294901760, %v1816_v29  ;;  %v1843_v39 = vand.u32 4294901760, %v1834_v36  ;;  %v1852_v43 = vsub.f32 %v210_v37, %v1845_v40  ;;  %v1870_v50 = vsub.f32 %v213_v44, %v1863_v47  ;;  %p1657_p2 = por %p1656_p1, %p1655_p0 }
  0x21   : > { %v265_v23 = vsub.f32 %v1790_v19, %v1799_v22  ;;  %596 = vmatmul.f32.vlgmr.msra.gmra.mxu3 %v1799_v22  ;;  %v273_v28 = vsub.f32 %v1793_v20, %v1805_v24  ;;  %v1881_v54 = vand.u32 4294901760, %v216_v51  ;;  %v1899_v61 = vand.u32 4294901760, %v219_v58 }
  0x22   : > { %1203 = vmatpush.msra.mxu1 %v871_v3  ;;  %1401 = vmatpush.msra.mxu3 %v871_v3  ;;  %v281_v35 = vsub.f32 %v1816_v29, %v1825_v32  ;;  %v289_v42 = vsub.f32 %v1834_v36, %v1843_v39  ;;  %v1861_v46 = vand.u32 4294901760, %v1852_v43  ;;  %v1879_v53 = vand.u32 4294901760, %v1870_v50  ;;  %p1658_p3 = pnand %p1657_p2, %p1653_p13 }
  0x23   : > { %v1809_v26 = vand.u32 4294901760, %v265_v23  ;;  %v1821_v31 = vand.u32 4294901760, %v273_v28  ;;  %v1888_v57 = vsub.f32 %v216_v51, %v1881_v54  ;;  %v1906_v0 = vsub.f32 %v219_v58, %v1899_v61  ;;  %v185_v58 = vld [vmem:[%s1778_s5 + $0x68] sm:$0xff] }
  0x24   : > { %v1839_v38 = vand.u32 4294901760, %v281_v35  ;;  %v1857_v45 = vand.u32 4294901760, %v289_v42  ;;  %v297_v49 = vsub.f32 %v1852_v43, %v1861_v46  ;;  %v305_v56 = vsub.f32 %v1870_v50, %v1879_v53  ;;  %v184_v42 = vld [vmem:[%s1778_s5 + $0x60] sm:$0xff] }
  0x25   : > { %267 = vmatmul.f32.vlgmr.msra.gmra.mxu0 %v1809_v26  ;;  %v1897_v60 = vand.u32 4294901760, %v1888_v57  ;;  %v222_v1 = vsel %vm196_vm0, %v180_v62, 0  ;;  %v1915_v3 = vand.u32 4294901760, %v1906_v0  ;;  %v228_v16 = vsel %vm196_vm0, %v182_v12, 0  ;;  %v186_v12 = vld [vmem:[%s1778_s5 + $0x70] sm:$0xff] }
  0x26   : > { %1105 = vmatpush.msra.mxu0 %v1018_v5  ;;  %v1875_v52 = vand.u32 4294901760, %v297_v49  ;;  %v1893_v59 = vand.u32 4294901760, %v305_v56  ;;  %v1917_v4 = vand.u32 4294901760, %v222_v1  ;;  %v181_v5 = vld [vmem:[%s1778_s5 + $0x48] sm:$0xff]  ;;  %v1953_v23 = vand.u32 4294901760, %v228_v16 }
  0x27   : > { %417 = vmatmul.f32.gmra.mxu1 %v1786_v17  ;;  %502 = vmatmul.f32.gmra.mxu2 %v1793_v20  ;;  %v313_v63 = vsub.f32 %v1888_v57, %v1897_v60  ;;  %v321_v6 = vsub.f32 %v1906_v0, %v1915_v3  ;;  %v225_v8 = vsel %vm196_vm0, %v181_v5, 0  ;;  %v231_v34 = vsel %vm196_vm0, %v183_v27, 0 }
  0x28   : > { %v1924_v7 = vsub.f32 %v222_v1, %v1917_v4  ;;  %v1935_v11 = vand.u32 4294901760, %v225_v8  ;;  %v1960_v30 = vsub.f32 %v228_v16, %v1953_v23  ;;  %v1971_v41 = vand.u32 4294901760, %v231_v34 }
  0x29   : > { %602 = vmatmul.f32.gmra.mxu3 %v1805_v24  ;;  %v1911_v2 = vand.u32 4294901760, %v313_v63  ;;  %v1929_v9 = vand.u32 4294901760, %v321_v6  ;;  %v234_v49 = vsel %vm196_vm0, %v184_v42, 0  ;;  %v237_v1 = vsel %vm196_vm0, %v185_v58, 0 }
  0x2a   : > { %2427 = vst [vmem:[#allocation5_spill] sm:$0xff] %v1924_v7  ;;  %v1933_v10 = vand.u32 4294901760, %v1924_v7  ;;  %v1942_v15 = vsub.f32 %v225_v8, %v1935_v11  ;;  %v1969_v37 = vand.u32 4294901760, %v1960_v30  ;;  %v1978_v48 = vsub.f32 %v231_v34, %v1971_v41 }
  0x2b   : > { %2430 = vst [vmem:[#allocation8_spill] sm:$0xff] %v1960_v30  ;;  %v1989_v56 = vand.u32 4294901760, %v234_v49  ;;  %v2007_v8 = vand.u32 4294901760, %v237_v1  ;;  %v240_v27 = vsel %vm196_vm0, %v186_v12, 0 }
  0x2c   : > { %v329_v13 = vsub.f32 %v1924_v7, %v1933_v10  ;;  %2428 = vst [vmem:[#allocation6_spill] sm:$0xff] %v1942_v15  ;;  %v1951_v21 = vand.u32 4294901760, %v1942_v15  ;;  %v345_v44 = vsub.f32 %v1960_v30, %v1969_v37  ;;  %v1987_v55 = vand.u32 4294901760, %v1978_v48 }
  0x2d   : > { %275 = vmatmul.f32.gmra.mxu0 %v1821_v31  ;;  %2431 = vst [vmem:[#allocation9_spill] sm:$0xff] %v1969_v37  ;;  %v1996_v63 = vsub.f32 %v234_v49, %v1989_v56  ;;  %v2014_v16 = vsub.f32 %v237_v1, %v2007_v8  ;;  %v2025_v42 = vand.u32 4294901760, %v240_v27 }
  0x2e   : > { %v1947_v18 = vand.u32 4294901760, %v329_v13  ;;  %2429 = vst [vmem:[#allocation7_spill] sm:$0xff] %v1951_v21  ;;  %v337_v28 = vsub.f32 %v1942_v15, %v1951_v21  ;;  %v1983_v51 = vand.u32 4294901760, %v345_v44  ;;  %v353_v62 = vsub.f32 %v1978_v48, %v1987_v55  ;;  %v187_v44 = vld [vmem:[%s1778_s5 + $0x78] sm:$0xff] }
  0x2f   : > { %421 = vmatmul.f32.gmra.mxu1 %v1807_v25  ;;  %507 = vmatmul.f32.gmra.mxu2 %v1816_v29  ;;  %2432 = vst [vmem:[#allocation10_spill] sm:$0xff] %v1978_v48  ;;  %v2005_v6 = vand.u32 4294901760, %v1996_v63  ;;  %v2023_v34 = vand.u32 4294901760, %v2014_v16  ;;  %v2032_v58 = vsub.f32 %v240_v27, %v2025_v42 }
  0x30   : > { %v1965_v35 = vand.u32 4294901760, %v337_v28  ;;  %2433 = vst [vmem:[#allocation11_spill] sm:$0xff] %v1987_v55  ;;  %v2001_v5 = vand.u32 4294901760, %v353_v62  ;;  %v243_v62 = vsel %vm196_vm0, %v187_v44, 0 }
  0x31   : > { %608 = vmatmul.f32.gmra.mxu3 %v1825_v32  ;;  %2434 = vst [vmem:[#allocation12_spill] sm:$0xff] %v1996_v63  ;;  %v361_v13 = vsub.f32 %v1996_v63, %v2005_v6  ;;  %v369_v49 = vsub.f32 %v2014_v16, %v2023_v34  ;;  %v2041_v12 = vand.u32 4294901760, %v2032_v58 }
  0x32   : > { %2435 = vst [vmem:[#allocation13_spill] sm:$0xff] %v2005_v6 }
  0x33   : > { %2436 = vst [vmem:[#allocation14_spill] sm:$0xff] %v2014_v16  ;;  %v2019_v28 = vand.u32 4294901760, %v361_v13  ;;  %v2037_v1 = vand.u32 4294901760, %v369_v49  ;;  %v2043_v13 = vand.u32 4294901760, %v243_v62  ;;  %v377_v27 = vsub.f32 %v2032_v58, %v2041_v12 }
  0x34   : > { %2437 = vst [vmem:[#allocation15_spill] sm:$0xff] %v2023_v34 }
  0x35   : > { %283 = vmatmul.f32.gmra.mxu0 %v1839_v38  ;;  %2438 = vst [vmem:[#allocation16_spill] sm:$0xff] %v2032_v58  ;;  %v2053_v44 = vand.u32 4294901760, %v377_v27 }
  0x36   : > { %2439 = vst [vmem:[#allocation17_spill] sm:$0xff] %v2041_v12 }
  0x37   : > { %425 = vmatmul.f32.gmra.mxu1 %v1827_v33  ;;  %512 = vmatmul.f32.gmra.mxu2 %v1834_v36 }
  0x39   : > { %614 = vmatmul.f32.gmra.mxu3 %v1843_v39 }
  0x3d   : > { %291 = vmatmul.f32.gmra.mxu0 %v1857_v45 }
  0x3f   : > { %429 = vmatmul.f32.gmra.mxu1 %v1845_v40  ;;  %517 = vmatmul.f32.gmra.mxu2 %v1852_v43 }
  0x41   : > { %620 = vmatmul.f32.gmra.mxu3 %v1861_v46 }
  0x45   : > { %299 = vmatmul.f32.gmra.mxu0 %v1875_v52 }
  0x47   : > { %433 = vmatmul.f32.gmra.mxu1 %v1863_v47  ;;  %522 = vmatmul.f32.gmra.mxu2 %v1870_v50 }
  0x49   : > { %626 = vmatmul.f32.gmra.mxu3 %v1879_v53 }
  0x4d   : > { %307 = vmatmul.f32.gmra.mxu0 %v1893_v59 }
  0x4f   : > { %437 = vmatmul.f32.gmra.mxu1 %v1881_v54  ;;  %527 = vmatmul.f32.gmra.mxu2 %v1888_v57 }
  0x51   : > { %632 = vmatmul.f32.gmra.mxu3 %v1897_v60 }
  0x55   : > { %315 = vmatmul.f32.gmra.mxu0 %v1911_v2 }
  0x57   : > { %441 = vmatmul.f32.gmra.mxu1 %v1899_v61  ;;  %532 = vmatmul.f32.gmra.mxu2 %v1906_v0 }
  0x59   : > { %638 = vmatmul.f32.gmra.mxu3 %v1915_v3 }
  0x5d   : > { %323 = vmatmul.f32.gmra.mxu0 %v1929_v9 }
  0x5f   : > { %445 = vmatmul.f32.gmra.mxu1 %v1917_v4  ;;  %537 = vmatmul.f32.gmra.mxu2 %v1924_v7 }
  0x61   : > { %644 = vmatmul.f32.gmra.mxu3 %v1933_v10 }
  0x65   : > { %331 = vmatmul.f32.gmra.mxu0 %v1947_v18 }
  0x67   : > { %449 = vmatmul.f32.gmra.mxu1 %v1935_v11  ;;  %542 = vmatmul.f32.gmra.mxu2 %v1942_v15 }
  0x69   : > { %650 = vmatmul.f32.gmra.mxu3 %v1951_v21 }
  0x6d   : > { %339 = vmatmul.f32.gmra.mxu0 %v1965_v35 }
  0x6f   : > { %453 = vmatmul.f32.gmra.mxu1 %v1953_v23  ;;  %547 = vmatmul.f32.gmra.mxu2 %v1960_v30 }
  0x71   : > { %656 = vmatmul.f32.gmra.mxu3 %v1969_v37 }
  0x75   : > { %347 = vmatmul.f32.gmra.mxu0 %v1983_v51 }
  0x77   : > { %457 = vmatmul.f32.gmra.mxu1 %v1971_v41  ;;  %552 = vmatmul.f32.gmra.mxu2 %v1978_v48 }
  0x79   : > { %662 = vmatmul.f32.gmra.mxu3 %v1987_v55 }
  0x7d   : > { %355 = vmatmul.f32.gmra.mxu0 %v2001_v5 }
  0x7f   : > { %461 = vmatmul.f32.gmra.mxu1 %v1989_v56  ;;  %557 = vmatmul.f32.gmra.mxu2 %v1996_v63  ;;  %v2049_v63 = vsub.f32 %v243_v62, %v2043_v13 }
  0x81   : > { %668 = vmatmul.f32.gmra.mxu3 %v2005_v6  ;;  %2440 = vst [vmem:[#allocation18_spill] sm:$0xff] %v2049_v63  ;;  %v2057_v49 = vand.u32 4294901760, %v2049_v63 }
  0x83   : > { %2441 = vst [vmem:[#allocation19_spill] sm:$0xff] %v2057_v49 }
  0x85   : > { %363 = vmatmul.f32.gmra.mxu0 %v2019_v28 }
  0x87   : > { %465 = vmatmul.f32.gmra.mxu1 %v2007_v8  ;;  %562 = vmatmul.f32.gmra.mxu2 %v2014_v16  ;;  %v385_v16 = vsub.f32 %v2049_v63, %v2057_v49 }
  0x89   : > { %674 = vmatmul.f32.gmra.mxu3 %v2023_v34  ;;  %v2064_v62 = vand.u32 4294901760, %v385_v16 }
  0x8d   : > { %371 = vmatmul.f32.gmra.mxu0 %v2037_v1 }
  0x8f   : > { %469 = vmatmul.f32.gmra.mxu1 %v2025_v42  ;;  %567 = vmatmul.f32.gmra.mxu2 %v2032_v58  ;;  %v2070_v58 = vld [vmem:[%s2408_s2] sm:$0x3] }
  0x91   : > { %680 = vmatmul.f32.gmra.mxu3 %v2041_v12  ;;  %v2075_v12 = vperm.slane %v2070_v58, 0 }
  0x95   : > { %379 = vmatmul.f32.gmra.mxu0 %v2053_v44 }
  0x97   : > { %473 = vmatmul.f32.gmra.mxu1 %v2043_v13  ;;  %572 = vmatmul.f32.gmra.mxu2 %v2049_v63 }
  0x99   : > { %686 = vmatmul.f32.gmra.mxu3 %v2057_v49 }
  0x9c   : > { %v414_v27 = vpop.f32.mrf.mxu1 }
  0x9d   : > { %387 = vmatmul.f32.gmra.mxu0 %v2064_v62 }
  0x9f   : > { %792 = vmatmul.f32.vlgmr.msrb.gmra.mxu1 %v1784_v14  ;;  %878 = vmatmul.f32.vlgmr.msrb.gmra.mxu2 %v1809_v26 }
  0xa1   : > { %1024 = vmatmul.f32.vlgmr.msrb.gmra.mxu3 %v1784_v14 }
  0xa2   : > { %v268_v16 = vpop.f32.mrf.mxu0  ;;  %v498_v63 = vpop.f32.mrf.mxu2 }
  0xa3   : > { %v269_v49 = vadd.f32 %v268_v16, %v2075_v12 }
  0xa4   : > { %v418_v34 = vpop.f32.mrf.mxu1  ;;  %v597_v6 = vpop.f32.mrf.mxu3 }
  0xa5   : > { %v415_v48 = vadd.f32 %v414_v27, %v269_v49  ;;  %710 = vmatmul.f32.vlgmr.msrb.gmra.mxu0 %v1784_v14 }
  0xa7   : > { %796 = vmatmul.f32.gmra.mxu1 %v1786_v17  ;;  %v499_v55 = vadd.f32 %v498_v63, %v415_v48  ;;  %886 = vmatmul.f32.gmra.mxu2 %v1821_v31 }
  0xa9   : > { %v2083_v30 = vadd.f32 %v597_v6, %v499_v55  ;;  %1028 = vmatmul.f32.gmra.mxu3 %v1786_v17 }
  0xaa   : > { %v276_v26 = vpop.f32.mrf.mxu0  ;;  %v503_v37 = vpop.f32.mrf.mxu2 }
  0xab   : > { %v277_v15 = vadd.f32 %v276_v26, %v2075_v12 }
  0xac   : > { %v422_v21 = vpop.f32.mrf.mxu1  ;;  %v603_v16 = vpop.f32.mrf.mxu3 }
  0xad   : > { %v419_v7 = vadd.f32 %v418_v34, %v277_v15  ;;  %714 = vmatmul.f32.gmra.mxu0 %v1786_v17 }
  0xaf   : > { %800 = vmatmul.f32.gmra.mxu1 %v1807_v25  ;;  %v504_v49 = vadd.f32 %v503_v37, %v419_v7  ;;  %894 = vmatmul.f32.gmra.mxu2 %v1839_v38 }
  0xb1   : > { %v2090_v48 = vadd.f32 %v603_v16, %v504_v49  ;;  %1032 = vmatmul.f32.gmra.mxu3 %v1807_v25 }
  0xb2   : > { %v284_v31 = vpop.f32.mrf.mxu0  ;;  %v508_v55 = vpop.f32.mrf.mxu2 }
  0xb3   : > { %v285_v63 = vadd.f32 %v284_v31, %v2075_v12 }
  0xb4   : > { %v426_v6 = vpop.f32.mrf.mxu1  ;;  %v609_v27 = vpop.f32.mrf.mxu3 }
  0xb5   : > { %v423_v26 = vadd.f32 %v422_v21, %v285_v63  ;;  %718 = vmatmul.f32.gmra.mxu0 %v1807_v25 }
  0xb7   : > { %804 = vmatmul.f32.gmra.mxu1 %v1827_v33  ;;  %v509_v15 = vadd.f32 %v508_v55, %v423_v26  ;;  %902 = vmatmul.f32.gmra.mxu2 %v1857_v45 }
  0xb9   : > { %v2097_v7 = vadd.f32 %v609_v27, %v509_v15  ;;  %1036 = vmatmul.f32.gmra.mxu3 %v1827_v33 }
  0xba   : > { %v292_v38 = vpop.f32.mrf.mxu0  ;;  %v513_v37 = vpop.f32.mrf.mxu2 }
  0xbb   : > { %v293_v34 = vadd.f32 %v292_v38, %v2075_v12 }
  0xbc   : > { %v430_v16 = vpop.f32.mrf.mxu1  ;;  %v615_v49 = vpop.f32.mrf.mxu3 }
  0xbd   : > { %v427_v31 = vadd.f32 %v426_v6, %v293_v34  ;;  %722 = vmatmul.f32.gmra.mxu0 %v1827_v33 }
  0xbf   : > { %808 = vmatmul.f32.gmra.mxu1 %v1845_v40  ;;  %v514_v21 = vadd.f32 %v513_v37, %v427_v31  ;;  %910 = vmatmul.f32.gmra.mxu2 %v1875_v52 }
  0xc1   : > { %v2104_v55 = vadd.f32 %v615_v49, %v514_v21  ;;  %1040 = vmatmul.f32.gmra.mxu3 %v1845_v40 }
  0xc2   : > { %v300_v45 = vpop.f32.mrf.mxu0  ;;  %v518_v63 = vpop.f32.mrf.mxu2 }
  0xc3   : > { %v301_v27 = vadd.f32 %v300_v45, %v2075_v12 }
  0xc4   : > { %v434_v26 = vpop.f32.mrf.mxu1  ;;  %v621_v15 = vpop.f32.mrf.mxu3 }
  0xc5   : > { %v431_v38 = vadd.f32 %v430_v16, %v301_v27  ;;  %726 = vmatmul.f32.gmra.mxu0 %v1845_v40 }
  0xc7   : > { %812 = vmatmul.f32.gmra.mxu1 %v1863_v47  ;;  %v519_v6 = vadd.f32 %v518_v63, %v431_v38  ;;  %918 = vmatmul.f32.gmra.mxu2 %v1893_v59 }
  0xc9   : > { %v2111_v37 = vadd.f32 %v621_v15, %v519_v6  ;;  %1044 = vmatmul.f32.gmra.mxu3 %v1863_v47 }
  0xca   : > { %v308_v52 = vpop.f32.mrf.mxu0  ;;  %v523_v34 = vpop.f32.mrf.mxu2 }
  0xcb   : > { %v309_v49 = vadd.f32 %v308_v52, %v2075_v12 }
  0xcc   : > { %v438_v31 = vpop.f32.mrf.mxu1  ;;  %v627_v21 = vpop.f32.mrf.mxu3 }
  0xcd   : > { %v435_v45 = vadd.f32 %v434_v26, %v309_v49  ;;  %730 = vmatmul.f32.gmra.mxu0 %v1863_v47 }
  0xcf   : > { %816 = vmatmul.f32.gmra.mxu1 %v1881_v54  ;;  %v524_v16 = vadd.f32 %v523_v34, %v435_v45  ;;  %926 = vmatmul.f32.gmra.mxu2 %v1911_v2 }
  0xd1   : > { %v2118_v63 = vadd.f32 %v627_v21, %v524_v16  ;;  %1048 = vmatmul.f32.gmra.mxu3 %v1881_v54 }
  0xd2   : > { %v316_v59 = vpop.f32.mrf.mxu0  ;;  %v528_v27 = vpop.f32.mrf.mxu2 }
  0xd3   : > { %v317_v15 = vadd.f32 %v316_v59, %v2075_v12 }
  0xd4   : > { %v442_v38 = vpop.f32.mrf.mxu1  ;;  %v633_v6 = vpop.f32.mrf.mxu3 }
  0xd5   : > { %v439_v52 = vadd.f32 %v438_v31, %v317_v15  ;;  %734 = vmatmul.f32.gmra.mxu0 %v1881_v54 }
  0xd7   : > { %820 = vmatmul.f32.gmra.mxu1 %v1899_v61  ;;  %v529_v26 = vadd.f32 %v528_v27, %v439_v52  ;;  %934 = vmatmul.f32.gmra.mxu2 %v1929_v9 }
  0xd9   : > { %v2125_v34 = vadd.f32 %v633_v6, %v529_v26  ;;  %1052 = vmatmul.f32.gmra.mxu3 %v1899_v61 }
  0xda   : > { %v324_v2 = vpop.f32.mrf.mxu0  ;;  %v533_v49 = vpop.f32.mrf.mxu2 }
  0xdb   : > { %v325_v21 = vadd.f32 %v324_v2, %v2075_v12 }
  0xdc   : > { %v446_v45 = vpop.f32.mrf.mxu1  ;;  %v639_v16 = vpop.f32.mrf.mxu3 }
  0xdd   : > { %v443_v59 = vadd.f32 %v442_v38, %v325_v21  ;;  %738 = vmatmul.f32.gmra.mxu0 %v1899_v61 }
  0xdf   : > { %824 = vmatmul.f32.gmra.mxu1 %v1917_v4  ;;  %v534_v31 = vadd.f32 %v533_v49, %v443_v59  ;;  %942 = vmatmul.f32.gmra.mxu2 %v1947_v18 }
  0xe1   : > { %v2132_v27 = vadd.f32 %v639_v16, %v534_v31  ;;  %1056 = vmatmul.f32.gmra.mxu3 %v1917_v4 }
  0xe2   : > { %v332_v9 = vpop.f32.mrf.mxu0  ;;  %v538_v15 = vpop.f32.mrf.mxu2 }
  0xe3   : > { %v333_v6 = vadd.f32 %v332_v9, %v2075_v12 }
  0xe4   : > { %v450_v52 = vpop.f32.mrf.mxu1  ;;  %v645_v26 = vpop.f32.mrf.mxu3 }
  0xe5   : > { %v447_v2 = vadd.f32 %v446_v45, %v333_v6  ;;  %742 = vmatmul.f32.gmra.mxu0 %v1917_v4 }
  0xe7   : > { %828 = vmatmul.f32.gmra.mxu1 %v1935_v11  ;;  %v539_v38 = vadd.f32 %v538_v15, %v447_v2  ;;  %950 = vmatmul.f32.gmra.mxu2 %v1965_v35 }
  0xe9   : > { %v2139_v49 = vadd.f32 %v645_v26, %v539_v38  ;;  %1060 = vmatmul.f32.gmra.mxu3 %v1935_v11 }
  0xea   : > { %v340_v18 = vpop.f32.mrf.mxu0  ;;  %v543_v21 = vpop.f32.mrf.mxu2 }
  0xeb   : > { %v341_v16 = vadd.f32 %v340_v18, %v2075_v12 }
  0xec   : > { %v454_v59 = vpop.f32.mrf.mxu1  ;;  %v651_v31 = vpop.f32.mrf.mxu3 }
  0xed   : > { %v451_v9 = vadd.f32 %v450_v52, %v341_v16  ;;  %746 = vmatmul.f32.gmra.mxu0 %v1935_v11 }
  0xef   : > { %832 = vmatmul.f32.gmra.mxu1 %v1953_v23  ;;  %v544_v45 = vadd.f32 %v543_v21, %v451_v9  ;;  %958 = vmatmul.f32.gmra.mxu2 %v1983_v51 }
  0xf1   : > { %v2146_v15 = vadd.f32 %v651_v31, %v544_v45  ;;  %1064 = vmatmul.f32.gmra.mxu3 %v1953_v23 }
  0xf2   : > { %v348_v35 = vpop.f32.mrf.mxu0  ;;  %v548_v6 = vpop.f32.mrf.mxu2 }
  0xf3   : > { %v349_v26 = vadd.f32 %v348_v35, %v2075_v12 }
  0xf4   : > { %v458_v2 = vpop.f32.mrf.mxu1  ;;  %v657_v38 = vpop.f32.mrf.mxu3 }
  0xf5   : > { %v455_v18 = vadd.f32 %v454_v59, %v349_v26  ;;  %750 = vmatmul.f32.gmra.mxu0 %v1953_v23 }
  0xf7   : > { %836 = vmatmul.f32.gmra.mxu1 %v1971_v41  ;;  %v549_v52 = vadd.f32 %v548_v6, %v455_v18  ;;  %966 = vmatmul.f32.gmra.mxu2 %v2001_v5 }
  0xf9   : > { %v2153_v21 = vadd.f32 %v657_v38, %v549_v52  ;;  %1068 = vmatmul.f32.gmra.mxu3 %v1971_v41 }
  0xfa   : > { %v356_v51 = vpop.f32.mrf.mxu0  ;;  %v553_v16 = vpop.f32.mrf.mxu2 }
  0xfb   : > { %v357_v31 = vadd.f32 %v356_v51, %v2075_v12 }
  0xfc   : > { %v462_v9 = vpop.f32.mrf.mxu1  ;;  %v663_v45 = vpop.f32.mrf.mxu3 }
  0xfd   : > { %v459_v35 = vadd.f32 %v458_v2, %v357_v31  ;;  %754 = vmatmul.f32.gmra.mxu0 %v1971_v41 }
  0xff   : > { %840 = vmatmul.f32.gmra.mxu1 %v1989_v56  ;;  %v554_v59 = vadd.f32 %v553_v16, %v459_v35  ;;  %974 = vmatmul.f32.gmra.mxu2 %v2019_v28 }
 0x101   : > { %v2160_v6 = vadd.f32 %v663_v45, %v554_v59  ;;  %1072 = vmatmul.f32.gmra.mxu3 %v1989_v56 }
 0x102   : > { %v364_v5 = vpop.f32.mrf.mxu0  ;;  %v558_v26 = vpop.f32.mrf.mxu2 }
 0x103   : > { %v365_v38 = vadd.f32 %v364_v5, %v2075_v12 }
 0x104   : > { %v466_v18 = vpop.f32.mrf.mxu1  ;;  %v669_v52 = vpop.f32.mrf.mxu3 }
 0x105   : > { %v463_v51 = vadd.f32 %v462_v9, %v365_v38  ;;  %758 = vmatmul.f32.gmra.mxu0 %v1989_v56 }
 0x107   : > { %844 = vmatmul.f32.gmra.mxu1 %v2007_v8  ;;  %v559_v2 = vadd.f32 %v558_v26, %v463_v51  ;;  %982 = vmatmul.f32.gmra.mxu2 %v2037_v1 }
 0x109   : > { %v2167_v16 = vadd.f32 %v669_v52, %v559_v2  ;;  %1076 = vmatmul.f32.gmra.mxu3 %v2007_v8 }
 0x10a   : > { %v372_v28 = vpop.f32.mrf.mxu0  ;;  %v563_v31 = vpop.f32.mrf.mxu2 }
 0x10b   : > { %v373_v45 = vadd.f32 %v372_v28, %v2075_v12 }
 0x10c   : > { %v470_v35 = vpop.f32.mrf.mxu1  ;;  %v675_v59 = vpop.f32.mrf.mxu3 }
 0x10d   : > { %v467_v5 = vadd.f32 %v466_v18, %v373_v45  ;;  %762 = vmatmul.f32.gmra.mxu0 %v2007_v8 }
 0x10f   : > { %848 = vmatmul.f32.gmra.mxu1 %v2025_v42  ;;  %v564_v9 = vadd.f32 %v563_v31, %v467_v5  ;;  %990 = vmatmul.f32.gmra.mxu2 %v2053_v44 }
 0x111   : > { %v2174_v26 = vadd.f32 %v675_v59, %v564_v9  ;;  %1080 = vmatmul.f32.gmra.mxu3 %v2025_v42 }
 0x112   : > { %v380_v1 = vpop.f32.mrf.mxu0  ;;  %v568_v38 = vpop.f32.mrf.mxu2 }
 0x113   : > { %v381_v52 = vadd.f32 %v380_v1, %v2075_v12 }
 0x114   : > { %v474_v51 = vpop.f32.mrf.mxu1  ;;  %v681_v2 = vpop.f32.mrf.mxu3 }
 0x115   : > { %v471_v28 = vadd.f32 %v470_v35, %v381_v52  ;;  %766 = vmatmul.f32.gmra.mxu0 %v2025_v42 }
 0x117   : > { %852 = vmatmul.f32.gmra.mxu1 %v2043_v13  ;;  %v569_v18 = vadd.f32 %v568_v38, %v471_v28  ;;  %998 = vmatmul.f32.gmra.mxu2 %v2064_v62  ;;  %v2190_v62 = vperm.slane %v2070_v58, 1 }
 0x119   : > { %v2181_v44 = vadd.f32 %v681_v2, %v569_v18  ;;  %1084 = vmatmul.f32.gmra.mxu3 %v2043_v13 }
 0x11a   : > { %v388_v31 = vpop.f32.mrf.mxu0  ;;  %v573_v45 = vpop.f32.mrf.mxu2 }
 0x11b   : > { %v389_v59 = vadd.f32 %v388_v31, %v2075_v12 }
 0x11c   : > { %v793_v5 = vpop.f32.mrf.mxu1  ;;  %v687_v9 = vpop.f32.mrf.mxu3 }
 0x11d   : > { %v475_v1 = vadd.f32 %v474_v51, %v389_v59  ;;  %770 = vmatmul.f32.gmra.mxu0 %v2043_v13 }
 0x11f   : > { %1207 = vmatmul.f32.vlgmr.msra.gmra.mxu1 %v1799_v22  ;;  %v574_v35 = vadd.f32 %v573_v45, %v475_v1  ;;  %1321 = vmatmul.f32.vlgmr.msra.gmra.mxu2 %v1784_v14 }
 0x121   : > { %v2192_v38 = vadd.f32 %v687_v9, %v574_v35  ;;  %1403 = vmatmul.f32.vlgmr.msra.gmra.mxu3 %v1784_v14 }
 0x122   : > { %v711_v12 = vpop.f32.mrf.mxu0  ;;  %v879_v52 = vpop.f32.mrf.mxu2 }
 0x123   : > { %v712_v51 = vadd.f32 %v711_v12, %v2083_v30  ;;  %v880_v2 = vadd.f32 %v879_v52, %v2190_v62 }
 0x124   : > { %v797_v28 = vpop.f32.mrf.mxu1  ;;  %v1025_v22 = vpop.f32.mrf.mxu3 }
 0x125   : > { %v794_v18 = vadd.f32 %v793_v5, %v712_v51  ;;  %1108 = vmatmul.f32.vlgmr.msra.gmra.mxu0 %v1790_v19  ;;  %v2200_v31 = vadd.f32 %v1025_v22, %v880_v2 }
 0x127   : > { %1213 = vmatmul.f32.gmra.mxu1 %v1805_v24  ;;  %1467 = vst [vmem:[%s2203_s10] sm:$0xff] %v794_v18  ;;  %1325 = vmatmul.f32.gmra.mxu2 %v1786_v17 }
 0x129   : > { %1407 = vmatmul.f32.gmra.mxu3 %v1786_v17 }
 0x12a   : > { %v715_v14 = vpop.f32.mrf.mxu0  ;;  %v887_v30 = vpop.f32.mrf.mxu2 }
 0x12b   : > { %v716_v58 = vadd.f32 %v715_v14, %v2090_v48  ;;  %v888_v45 = vadd.f32 %v887_v30, %v2190_v62 }
 0x12c   : > { %v801_v19 = vpop.f32.mrf.mxu1  ;;  %v1029_v59 = vpop.f32.mrf.mxu3 }
 0x12d   : > { %v798_v5 = vadd.f32 %v797_v28, %v716_v58  ;;  %1113 = vmatmul.f32.gmra.mxu0 %v1793_v20  ;;  %v2211_v24 = vadd.f32 %v1029_v59, %v888_v45 }
 0x12f   : > { %1219 = vmatmul.f32.gmra.mxu1 %v1825_v32  ;;  %1469 = vst [vmem:[%s2203_s10 + $0x10] sm:$0xff] %v798_v5  ;;  %1329 = vmatmul.f32.gmra.mxu2 %v1807_v25 }
 0x131   : > { %1411 = vmatmul.f32.gmra.mxu3 %v1807_v25 }
 0x132   : > { %v719_v17 = vpop.f32.mrf.mxu0  ;;  %v895_v9 = vpop.f32.mrf.mxu2 }
 0x133   : > { %v720_v48 = vadd.f32 %v719_v17, %v2097_v7  ;;  %v896_v1 = vadd.f32 %v895_v9, %v2190_v62 }
 0x134   : > { %v805_v35 = vpop.f32.mrf.mxu1  ;;  %v1033_v12 = vpop.f32.mrf.mxu3 }
 0x135   : > { %v802_v52 = vadd.f32 %v801_v19, %v720_v48  ;;  %1118 = vmatmul.f32.gmra.mxu0 %v1816_v29  ;;  %v2220_v20 = vadd.f32 %v1033_v12, %v896_v1 }
 0x137   : > { %1225 = vmatmul.f32.gmra.mxu1 %v1843_v39  ;;  %1471 = vst [vmem:[%s2203_s10 + $0x20] sm:$0xff] %v802_v52  ;;  %1333 = vmatmul.f32.gmra.mxu2 %v1827_v33 }
 0x139   : > { %1415 = vmatmul.f32.gmra.mxu3 %v1827_v33 }
 0x13a   : > { %v723_v25 = vpop.f32.mrf.mxu0  ;;  %v903_v32 = vpop.f32.mrf.mxu2 }
 0x13b   : > { %v724_v7 = vadd.f32 %v723_v25, %v2104_v55  ;;  %v904_v51 = vadd.f32 %v903_v32, %v2190_v62 }
 0x13c   : > { %v809_v2 = vpop.f32.mrf.mxu1  ;;  %v1037_v28 = vpop.f32.mrf.mxu3 }
 0x13d   : > { %v806_v22 = vadd.f32 %v805_v35, %v724_v7  ;;  %1123 = vmatmul.f32.gmra.mxu0 %v1834_v36  ;;  %v2229_v29 = vadd.f32 %v1037_v28, %v904_v51 }
 0x13f   : > { %1231 = vmatmul.f32.gmra.mxu1 %v1861_v46  ;;  %1473 = vst [vmem:[%s2203_s10 + $0x30] sm:$0xff] %v806_v22  ;;  %1337 = vmatmul.f32.gmra.mxu2 %v1845_v40 }
 0x141   : > { %1419 = vmatmul.f32.gmra.mxu3 %v1845_v40 }
 0x142   : > { %v727_v33 = vpop.f32.mrf.mxu0  ;;  %v911_v39 = vpop.f32.mrf.mxu2 }
 0x143   : > { %v728_v55 = vadd.f32 %v727_v33, %v2111_v37  ;;  %v912_v18 = vadd.f32 %v911_v39, %v2190_v62 }
 0x144   : > { %v813_v14 = vpop.f32.mrf.mxu1  ;;  %v1041_v30 = vpop.f32.mrf.mxu3 }
 0x145   : > { %v810_v58 = vadd.f32 %v809_v2, %v728_v55  ;;  %1128 = vmatmul.f32.gmra.mxu0 %v1852_v43  ;;  %v2238_v36 = vadd.f32 %v1041_v30, %v912_v18 }
 0x147   : > { %1237 = vmatmul.f32.gmra.mxu1 %v1879_v53  ;;  %1475 = vst [vmem:[%s2203_s10 + $0x40] sm:$0xff] %v810_v58  ;;  %1341 = vmatmul.f32.gmra.mxu2 %v1863_v47  ;;  %v2445_v58 = vld [vmem:[#allocation9_spill] sm:$0xff] }
 0x149   : > { %1423 = vmatmul.f32.gmra.mxu3 %v1863_v47 }
 0x14a   : > { %v731_v40 = vpop.f32.mrf.mxu0  ;;  %v919_v46 = vpop.f32.mrf.mxu2 }
 0x14b   : > { %v732_v37 = vadd.f32 %v731_v40, %v2118_v63  ;;  %v920_v45 = vadd.f32 %v919_v46, %v2190_v62 }
 0x14c   : > { %v817_v19 = vpop.f32.mrf.mxu1  ;;  %v1045_v59 = vpop.f32.mrf.mxu3 }
 0x14d   : > { %v814_v5 = vadd.f32 %v813_v14, %v732_v37  ;;  %1133 = vmatmul.f32.gmra.mxu0 %v1870_v50  ;;  %v2247_v43 = vadd.f32 %v1045_v59, %v920_v45  ;;  %v2444_v14 = vld [vmem:[#allocation6_spill] sm:$0xff]  ;;  %v2446_v59 = vld [vmem:[#allocation8_spill] sm:$0xff] }
 0x14f   : > { %1243 = vmatmul.f32.gmra.mxu1 %v1897_v60  ;;  %1477 = vst [vmem:[%s2203_s10 + $0x50] sm:$0xff] %v814_v5  ;;  %1345 = vmatmul.f32.gmra.mxu2 %v1881_v54 }
 0x151   : > { %1427 = vmatmul.f32.gmra.mxu3 %v1881_v54 }
 0x152   : > { %v735_v47 = vpop.f32.mrf.mxu0  ;;  %v927_v53 = vpop.f32.mrf.mxu2 }
 0x153   : > { %v736_v63 = vadd.f32 %v735_v47, %v2125_v34  ;;  %v928_v17 = vadd.f32 %v927_v53, %v2190_v62  ;;  %v2447_v47 = vld [vmem:[#allocation11_spill] sm:$0xff] }
 0x154   : > { %v821_v9 = vpop.f32.mrf.mxu1  ;;  %v1049_v48 = vpop.f32.mrf.mxu3 }
 0x155   : > { %v818_v1 = vadd.f32 %v817_v19, %v736_v63  ;;  %1138 = vmatmul.f32.gmra.mxu0 %v1888_v57  ;;  %v2256_v50 = vadd.f32 %v1049_v48, %v928_v17 }
 0x157   : > { %1249 = vmatmul.f32.gmra.mxu1 %v1915_v3  ;;  %1479 = vst [vmem:[%s2203_s10 + $0x60] sm:$0xff] %v818_v1  ;;  %1349 = vmatmul.f32.gmra.mxu2 %v1899_v61  ;;  %v2448_v1 = vld [vmem:[#allocation10_spill] sm:$0xff] }
 0x159   : > { %1431 = vmatmul.f32.gmra.mxu3 %v1899_v61 }
 0x15a   : > { %v739_v54 = vpop.f32.mrf.mxu0  ;;  %v935_v60 = vpop.f32.mrf.mxu2 }
 0x15b   : > { %v740_v34 = vadd.f32 %v739_v54, %v2132_v27  ;;  %v936_v35 = vadd.f32 %v935_v60, %v2190_v62  ;;  %v2449_v60 = vld [vmem:[#allocation13_spill] sm:$0xff] }
 0x15c   : > { %v825_v12 = vpop.f32.mrf.mxu1  ;;  %v1053_v52 = vpop.f32.mrf.mxu3 }
 0x15d   : > { %v822_v25 = vadd.f32 %v821_v9, %v740_v34  ;;  %1143 = vmatmul.f32.gmra.mxu0 %v1906_v0  ;;  %v2265_v57 = vadd.f32 %v1053_v52, %v936_v35  ;;  %v2442_v0 = vld [vmem:[#allocation5_spill] sm:$0xff] }
 0x15f   : > { %1255 = vmatmul.f32.gmra.mxu1 %v1933_v10  ;;  %1481 = vst [vmem:[%s2203_s10 + $0x70] sm:$0xff] %v822_v25  ;;  %1353 = vmatmul.f32.gmra.mxu2 %v1917_v4  ;;  %v2443_v10 = vld [vmem:[#allocation7_spill] sm:$0xff] }
 0x161   : > { %1435 = vmatmul.f32.gmra.mxu3 %v1917_v4 }
 0x162   : > { %v743_v61 = vpop.f32.mrf.mxu0  ;;  %v943_v3 = vpop.f32.mrf.mxu2 }
 0x163   : > { %v744_v27 = vadd.f32 %v743_v61, %v2139_v49  ;;  %v944_v32 = vadd.f32 %v943_v3, %v2190_v62  ;;  %v2450_v61 = vld [vmem:[#allocation12_spill] sm:$0xff] }
 0x164   : > { %v829_v7 = vpop.f32.mrf.mxu1  ;;  %v1057_v51 = vpop.f32.mrf.mxu3 }
 0x165   : > { %v826_v2 = vadd.f32 %v825_v12, %v744_v27  ;;  %1148 = vmatmul.f32.gmra.mxu0 %v2442_v0  ;;  %v2274_v28 = vadd.f32 %v1057_v51, %v944_v32  ;;  %v2451_v27 = vld [vmem:[#allocation15_spill] sm:$0xff] }
 0x167   : > { %1261 = vmatmul.f32.gmra.mxu1 %v2443_v10  ;;  %1483 = vst [vmem:[%s2203_s10 + $0x80] sm:$0xff] %v826_v2  ;;  %1357 = vmatmul.f32.gmra.mxu2 %v1935_v11  ;;  %v2452_v10 = vld [vmem:[#allocation14_spill] sm:$0xff] }
 0x169   : > { %1439 = vmatmul.f32.gmra.mxu3 %v1935_v11 }
 0x16a   : > { %v747_v4 = vpop.f32.mrf.mxu0  ;;  %v951_v22 = vpop.f32.mrf.mxu2 }
 0x16b   : > { %v748_v49 = vadd.f32 %v747_v4, %v2146_v15  ;;  %v952_v33 = vadd.f32 %v951_v22, %v2190_v62  ;;  %v2453_v22 = vld [vmem:[#allocation17_spill] sm:$0xff] }
 0x16c   : > { %v833_v39 = vpop.f32.mrf.mxu1  ;;  %v1061_v55 = vpop.f32.mrf.mxu3 }
 0x16d   : > { %v830_v18 = vadd.f32 %v829_v7, %v748_v49  ;;  %1153 = vmatmul.f32.gmra.mxu0 %v2444_v14  ;;  %v2283_v30 = vadd.f32 %v1061_v55, %v952_v33  ;;  %v2454_v14 = vld [vmem:[#allocation16_spill] sm:$0xff] }
 0x16f   : > { %1267 = vmatmul.f32.gmra.mxu1 %v2445_v58  ;;  %1485 = vst [vmem:[%s2203_s10 + $0x90] sm:$0xff] %v830_v18  ;;  %1361 = vmatmul.f32.gmra.mxu2 %v1953_v23 }
 0x171   : > { %1443 = vmatmul.f32.gmra.mxu3 %v1953_v23 }
 0x172   : > { %v751_v11 = vpop.f32.mrf.mxu0  ;;  %v959_v40 = vpop.f32.mrf.mxu2 }
 0x173   : > { %v752_v15 = vadd.f32 %v751_v11, %v2153_v21  ;;  %v960_v46 = vadd.f32 %v959_v40, %v2190_v62  ;;  %v2455_v11 = vld [vmem:[#allocation19_spill] sm:$0xff] }
 0x174   : > { %v837_v37 = vpop.f32.mrf.mxu1  ;;  %v1065_v45 = vpop.f32.mrf.mxu3 }
 0x175   : > { %v834_v19 = vadd.f32 %v833_v39, %v752_v15  ;;  %1158 = vmatmul.f32.gmra.mxu0 %v2446_v59  ;;  %v2292_v5 = vadd.f32 %v1065_v45, %v960_v46 }
 0x177   : > { %1273 = vmatmul.f32.gmra.mxu1 %v2447_v47  ;;  %1487 = vst [vmem:[%s2203_s10 + $0xa0] sm:$0xff] %v834_v19  ;;  %1365 = vmatmul.f32.gmra.mxu2 %v1971_v41  ;;  %v2456_v19 = vld [vmem:[#allocation18_spill] sm:$0xff] }
 0x179   : > { %1447 = vmatmul.f32.gmra.mxu3 %v1971_v41 }
 0x17a   : > { %v755_v23 = vpop.f32.mrf.mxu0  ;;  %v967_v53 = vpop.f32.mrf.mxu2 }
 0x17b   : > { %v756_v21 = vadd.f32 %v755_v23, %v2160_v6  ;;  %v968_v63 = vadd.f32 %v967_v53, %v2190_v62 }
 0x17c   : > { %v841_v17 = vpop.f32.mrf.mxu1  ;;  %v1069_v9 = vpop.f32.mrf.mxu3 }
 0x17d   : > { %v838_v48 = vadd.f32 %v837_v37, %v756_v21  ;;  %1163 = vmatmul.f32.gmra.mxu0 %v2448_v1  ;;  %v2301_v54 = vadd.f32 %v1069_v9, %v968_v63 }
 0x17f   : > { %1279 = vmatmul.f32.gmra.mxu1 %v2449_v60  ;;  %1489 = vst [vmem:[%s2203_s10 + $0xb0] sm:$0xff] %v838_v48  ;;  %1369 = vmatmul.f32.gmra.mxu2 %v1989_v56 }
 0x181   : > { %1451 = vmatmul.f32.gmra.mxu3 %v1989_v56 }
 0x182   : > { %v759_v41 = vpop.f32.mrf.mxu0  ;;  %v975_v34 = vpop.f32.mrf.mxu2 }
 0x183   : > { %v760_v6 = vadd.f32 %v759_v41, %v2167_v16  ;;  %v976_v35 = vadd.f32 %v975_v34, %v2190_v62 }
 0x184   : > { %v845_v12 = vpop.f32.mrf.mxu1  ;;  %v1073_v52 = vpop.f32.mrf.mxu3 }
 0x185   : > { %v842_v25 = vadd.f32 %v841_v17, %v760_v6  ;;  %1168 = vmatmul.f32.gmra.mxu0 %v2450_v61  ;;  %v2310_v3 = vadd.f32 %v1073_v52, %v976_v35 }
 0x187   : > { %1285 = vmatmul.f32.gmra.mxu1 %v2451_v27  ;;  %1491 = vst [vmem:[%s2203_s10 + $0xc0] sm:$0xff] %v842_v25  ;;  %1373 = vmatmul.f32.gmra.mxu2 %v2007_v8 }
 0x189   : > { %1455 = vmatmul.f32.gmra.mxu3 %v2007_v8 }
 0x18a   : > { %v763_v56 = vpop.f32.mrf.mxu0  ;;  %v983_v32 = vpop.f32.mrf.mxu2 }
 0x18b   : > { %v764_v16 = vadd.f32 %v763_v56, %v2174_v26  ;;  %v984_v7 = vadd.f32 %v983_v32, %v2190_v62 }
 0x18c   : > { %v849_v51 = vpop.f32.mrf.mxu1  ;;  %v1077_v2 = vpop.f32.mrf.mxu3 }
 0x18d   : > { %v846_v0 = vadd.f32 %v845_v12, %v764_v16  ;;  %1173 = vmatmul.f32.gmra.mxu0 %v2452_v10  ;;  %v2319_v4 = vadd.f32 %v1077_v2, %v984_v7 }
 0x18f   : > { %1291 = vmatmul.f32.gmra.mxu1 %v2453_v22  ;;  %1493 = vst [vmem:[%s2203_s10 + $0xd0] sm:$0xff] %v846_v0  ;;  %1377 = vmatmul.f32.gmra.mxu2 %v2025_v42 }
 0x191   : > { %1459 = vmatmul.f32.gmra.mxu3 %v2025_v42 }
 0x192   : > { %v767_v8 = vpop.f32.mrf.mxu0  ;;  %v991_v49 = vpop.f32.mrf.mxu2 }
 0x193   : > { %v768_v26 = vadd.f32 %v767_v8, %v2181_v44  ;;  %v992_v33 = vadd.f32 %v991_v49, %v2190_v62 }
 0x194   : > { %v853_v39 = vpop.f32.mrf.mxu1  ;;  %v1081_v55 = vpop.f32.mrf.mxu3 }
 0x195   : > { %v850_v18 = vadd.f32 %v849_v51, %v768_v26  ;;  %1178 = vmatmul.f32.gmra.mxu0 %v2454_v14  ;;  %v2328_v58 = vadd.f32 %v1081_v55, %v992_v33 }
 0x197   : > { %1297 = vmatmul.f32.gmra.mxu1 %v2455_v11  ;;  %1495 = vst [vmem:[%s2203_s10 + $0xe0] sm:$0xff] %v850_v18  ;;  %1381 = vmatmul.f32.gmra.mxu2 %v2043_v13 }
 0x199   : > { %1463 = vmatmul.f32.gmra.mxu3 %v2043_v13 }
 0x19a   : > { %v771_v42 = vpop.f32.mrf.mxu0  ;;  %v999_v40 = vpop.f32.mrf.mxu2 }
 0x19b   : > { %v772_v44 = vadd.f32 %v771_v42, %v2192_v38  ;;  %v1000_v15 = vadd.f32 %v999_v40, %v2190_v62 }
 0x19c   : > { %v1208_v46 = vpop.f32.mrf.mxu1  ;;  %v1085_v37 = vpop.f32.mrf.mxu3 }
 0x19d   : > { %v854_v45 = vadd.f32 %v853_v39, %v772_v44  ;;  %1183 = vmatmul.f32.gmra.mxu0 %v2456_v19  ;;  %v2337_v59 = vadd.f32 %v1085_v37, %v1000_v15 }
 0x19f   : > { %1497 = vst [vmem:[%s2203_s10 + $0xf0] sm:$0xff] %v854_v45 }
 0x1a2   : > { %v1109_v47 = vpop.f32.mrf.mxu0  ;;  %v1322_v23 = vpop.f32.mrf.mxu2 }
 0x1a3   : > { %v1110_v53 = vadd.f32 %v1109_v47, %v2200_v31 }
 0x1a4   : > { %v1214_v13 = vpop.f32.mrf.mxu1  ;;  %v1404_v21 = vpop.f32.mrf.mxu3 }
 0x1a5   : > { %v1209_v63 = vadd.f32 %v1208_v46, %v1110_v53 }
 0x1a7   : > { %v1323_v38 = vadd.f32 %v1322_v23, %v1209_v63 }
 0x1a9   : > { %v1405_v17 = vadd.f32 %v1404_v21, %v1323_v38 }
 0x1aa   : > { %v1114_v62 = vpop.f32.mrf.mxu0  ;;  %v1326_v9 = vpop.f32.mrf.mxu2 }
 0x1ab   : > { %1468 = vst [vmem:[%s2203_s10 + $0x8] sm:$0xff] %v1405_v17  ;;  %v1115_v48 = vadd.f32 %v1114_v62, %v2211_v24 }
 0x1ac   : > { %v1220_v1 = vpop.f32.mrf.mxu1  ;;  %v1408_v60 = vpop.f32.mrf.mxu3 }
 0x1ad   : > { %v1215_v41 = vadd.f32 %v1214_v13, %v1115_v48 }
 0x1af   : > { %v1327_v34 = vadd.f32 %v1326_v9, %v1215_v41 }
 0x1b1   : > { %v1409_v6 = vadd.f32 %v1408_v60, %v1327_v34 }
 0x1b2   : > { %v1119_v35 = vpop.f32.mrf.mxu0  ;;  %v1330_v12 = vpop.f32.mrf.mxu2 }
 0x1b3   : > { %1470 = vst [vmem:[%s2203_s10 + $0x18] sm:$0xff] %v1409_v6  ;;  %v1120_v31 = vadd.f32 %v1119_v35, %v2220_v20 }
 0x1b4   : > { %v1226_v52 = vpop.f32.mrf.mxu1  ;;  %v1412_v25 = vpop.f32.mrf.mxu3 }
 0x1b5   : > { %v1221_v61 = vadd.f32 %v1220_v1, %v1120_v31 }
 0x1b7   : > { %v1331_v27 = vadd.f32 %v1330_v12, %v1221_v61 }
 0x1b9   : > { %v1413_v56 = vadd.f32 %v1412_v25, %v1331_v27 }
 0x1ba   : > { %v1124_v32 = vpop.f32.mrf.mxu0  ;;  %v1334_v16 = vpop.f32.mrf.mxu2 }
 0x1bb   : > { %1472 = vst [vmem:[%s2203_s10 + $0x28] sm:$0xff] %v1413_v56  ;;  %v1125_v24 = vadd.f32 %v1124_v32, %v2229_v29 }
 0x1bc   : > { %v1232_v7 = vpop.f32.mrf.mxu1  ;;  %v1416_v51 = vpop.f32.mrf.mxu3 }
 0x1bd   : > { %v1227_v2 = vadd.f32 %v1226_v52, %v1125_v24 }
 0x1bf   : > { %v1335_v0 = vadd.f32 %v1334_v16, %v1227_v2 }
 0x1c1   : > { %v1417_v10 = vadd.f32 %v1416_v51, %v1335_v0 }
 0x1c2   : > { %v1129_v22 = vpop.f32.mrf.mxu0  ;;  %v1338_v8 = vpop.f32.mrf.mxu2 }
 0x1c3   : > { %1474 = vst [vmem:[%s2203_s10 + $0x38] sm:$0xff] %v1417_v10  ;;  %v1130_v20 = vadd.f32 %v1129_v22, %v2238_v36 }
 0x1c4   : > { %v1238_v49 = vpop.f32.mrf.mxu1  ;;  %v1420_v26 = vpop.f32.mrf.mxu3 }
 0x1c5   : > { %v1233_v33 = vadd.f32 %v1232_v7, %v1130_v20 }
 0x1c7   : > { %v1339_v39 = vadd.f32 %v1338_v8, %v1233_v33 }
 0x1c9   : > { %v1421_v55 = vadd.f32 %v1420_v26, %v1339_v39 }
 0x1ca   : > { %v1134_v18 = vpop.f32.mrf.mxu0  ;;  %v1342_v14 = vpop.f32.mrf.mxu2 }
 0x1cb   : > { %1476 = vst [vmem:[%s2203_s10 + $0x48] sm:$0xff] %v1421_v55  ;;  %v1135_v29 = vadd.f32 %v1134_v18, %v2247_v43 }
 0x1cc   : > { %v1244_v11 = vpop.f32.mrf.mxu1  ;;  %v1424_v42 = vpop.f32.mrf.mxu3 }
 0x1cd   : > { %v1239_v40 = vadd.f32 %v1238_v49, %v1135_v29 }
 0x1cf   : > { %v1343_v44 = vadd.f32 %v1342_v14, %v1239_v40 }
 0x1d1   : > { %v1425_v15 = vadd.f32 %v1424_v42, %v1343_v44 }
 0x1d2   : > { %v1139_v46 = vpop.f32.mrf.mxu0  ;;  %v1346_v37 = vpop.f32.mrf.mxu2 }
 0x1d3   : > { %1478 = vst [vmem:[%s2203_s10 + $0x58] sm:$0xff] %v1425_v15  ;;  %v1140_v36 = vadd.f32 %v1139_v46, %v2256_v50 }
 0x1d4   : > { %v1250_v45 = vpop.f32.mrf.mxu1  ;;  %v1428_v19 = vpop.f32.mrf.mxu3 }
 0x1d5   : > { %v1245_v47 = vadd.f32 %v1244_v11, %v1140_v36 }
 0x1d7   : > { %v1347_v23 = vadd.f32 %v1346_v37, %v1245_v47 }
 0x1d9   : > { %v1429_v53 = vadd.f32 %v1428_v19, %v1347_v23 }
 0x1da   : > { %v1144_v13 = vpop.f32.mrf.mxu0  ;;  %v1350_v21 = vpop.f32.mrf.mxu2 }
 0x1db   : > { %1480 = vst [vmem:[%s2203_s10 + $0x68] sm:$0xff] %v1429_v53  ;;  %v1145_v43 = vadd.f32 %v1144_v13, %v2265_v57 }
 0x1dc   : > { %v1256_v63 = vpop.f32.mrf.mxu1  ;;  %v1432_v38 = vpop.f32.mrf.mxu3 }
 0x1dd   : > { %v1251_v17 = vadd.f32 %v1250_v45, %v1145_v43 }
 0x1df   : > { %v1351_v62 = vadd.f32 %v1350_v21, %v1251_v17 }
 0x1e1   : > { %v1433_v9 = vadd.f32 %v1432_v38, %v1351_v62 }
 0x1e2   : > { %v1149_v48 = vpop.f32.mrf.mxu0  ;;  %v1354_v1 = vpop.f32.mrf.mxu2 }
 0x1e3   : > { %1482 = vst [vmem:[%s2203_s10 + $0x78] sm:$0xff] %v1433_v9  ;;  %v1150_v50 = vadd.f32 %v1149_v48, %v2274_v28 }
 0x1e4   : > { %v1262_v60 = vpop.f32.mrf.mxu1  ;;  %v1436_v41 = vpop.f32.mrf.mxu3 }
 0x1e5   : > { %v1257_v34 = vadd.f32 %v1256_v63, %v1150_v50 }
 0x1e7   : > { %v1355_v6 = vadd.f32 %v1354_v1, %v1257_v34 }
 0x1e9   : > { %v1437_v35 = vadd.f32 %v1436_v41, %v1355_v6 }
 0x1ea   : > { %v1154_v12 = vpop.f32.mrf.mxu0  ;;  %v1358_v31 = vpop.f32.mrf.mxu2 }
 0x1eb   : > { %1484 = vst [vmem:[%s2203_s10 + $0x88] sm:$0xff] %v1437_v35  ;;  %v1155_v57 = vadd.f32 %v1154_v12, %v2283_v30 }
 0x1ec   : > { %v1268_v52 = vpop.f32.mrf.mxu1  ;;  %v1440_v25 = vpop.f32.mrf.mxu3 }
 0x1ed   : > { %v1263_v61 = vadd.f32 %v1262_v60, %v1155_v57 }
 0x1ef   : > { %v1359_v27 = vadd.f32 %v1358_v31, %v1263_v61 }
 0x1f1   : > { %v1441_v56 = vadd.f32 %v1440_v25, %v1359_v27 }
 0x1f2   : > { %v1159_v32 = vpop.f32.mrf.mxu0  ;;  %v1362_v16 = vpop.f32.mrf.mxu2 }
 0x1f3   : > { %1486 = vst [vmem:[%s2203_s10 + $0x98] sm:$0xff] %v1441_v56  ;;  %v1160_v28 = vadd.f32 %v1159_v32, %v2292_v5 }
 0x1f4   : > { %v1274_v24 = vpop.f32.mrf.mxu1  ;;  %v1444_v7 = vpop.f32.mrf.mxu3 }
 0x1f5   : > { %v1269_v51 = vadd.f32 %v1268_v52, %v1160_v28 }
 0x1f7   : > { %v1363_v2 = vadd.f32 %v1362_v16, %v1269_v51 }
 0x1f9   : > { %v1445_v0 = vadd.f32 %v1444_v7, %v1363_v2 }
 0x1fa   : > { %v1164_v10 = vpop.f32.mrf.mxu0  ;;  %v1366_v22 = vpop.f32.mrf.mxu2 }
 0x1fb   : > { %1488 = vst [vmem:[%s2203_s10 + $0xa8] sm:$0xff] %v1445_v0  ;;  %v1165_v30 = vadd.f32 %v1164_v10, %v2301_v54 }
 0x1fc   : > { %v1448_v8 = vpop.f32.mrf.mxu3  ;;  %v1280_v20 = vpop.f32.mrf.mxu1 }
 0x1fd   : > { %v1275_v49 = vadd.f32 %v1274_v24, %v1165_v30 }
 0x1ff   : > { %v1367_v26 = vadd.f32 %v1366_v22, %v1275_v49 }
 0x201   : > { %v1449_v33 = vadd.f32 %v1448_v8, %v1367_v26 }
 0x202   : > { %v1169_v39 = vpop.f32.mrf.mxu0  ;;  %v1370_v55 = vpop.f32.mrf.mxu2 }
 0x203   : > { %1490 = vst [vmem:[%s2203_s10 + $0xb8] sm:$0xff] %v1449_v33  ;;  %v1170_v5 = vadd.f32 %v1169_v39, %v2310_v3 }
 0x204   : > { %v1452_v18 = vpop.f32.mrf.mxu3  ;;  %v1286_v29 = vpop.f32.mrf.mxu1 }
 0x205   : > { %v1281_v14 = vadd.f32 %v1280_v20, %v1170_v5 }
 0x207   : > { %v1371_v11 = vadd.f32 %v1370_v55, %v1281_v14 }
 0x209   : > { %v1453_v42 = vadd.f32 %v1452_v18, %v1371_v11 }
 0x20a   : > { %v1174_v40 = vpop.f32.mrf.mxu0  ;;  %v1374_v54 = vpop.f32.mrf.mxu2 }
 0x20b   : > { %1492 = vst [vmem:[%s2203_s10 + $0xc8] sm:$0xff] %v1453_v42  ;;  %v1175_v44 = vadd.f32 %v1174_v40, %v2319_v4 }
 0x20c   : > { %v1456_v15 = vpop.f32.mrf.mxu3  ;;  %v1292_v36 = vpop.f32.mrf.mxu1 }
 0x20d   : > { %v1287_v46 = vadd.f32 %v1286_v29, %v1175_v44 }
 0x20f   : > { %v1375_v37 = vadd.f32 %v1374_v54, %v1287_v46 }
 0x211   : > { %v1457_v45 = vadd.f32 %v1456_v15, %v1375_v37 }
 0x212   : > { %v1179_v19 = vpop.f32.mrf.mxu0  ;;  %v1378_v3 = vpop.f32.mrf.mxu2 }
 0x213   : > { %1494 = vst [vmem:[%s2203_s10 + $0xd8] sm:$0xff] %v1457_v45  ;;  %v1180_v47 = vadd.f32 %v1179_v19, %v2328_v58 }
 0x214   : > { %v1460_v23 = vpop.f32.mrf.mxu3  ;;  %v1298_v43 = vpop.f32.mrf.mxu1 }
 0x215   : > { %v1293_v53 = vadd.f32 %v1292_v36, %v1180_v47 }
 0x217   : > { %v1379_v13 = vadd.f32 %v1378_v3, %v1293_v53 }
 0x219   : > { %v1461_v21 = vadd.f32 %v1460_v23, %v1379_v13 }
 0x21a   : > { %v1184_v4 = vpop.f32.mrf.mxu0  ;;  %v1382_v38 = vpop.f32.mrf.mxu2 }
 0x21b   : > { %1496 = vst [vmem:[%s2203_s10 + $0xe8] sm:$0xff] %v1461_v21  ;;  %v1185_v63 = vadd.f32 %v1184_v4, %v2337_v59 }
 0x21c   : > { %v1464_v58 = vpop.f32.mrf.mxu3 }
 0x21d   : > { %v1299_v17 = vadd.f32 %v1298_v43, %v1185_v63 }
 0x21f   : > { %v1383_v62 = vadd.f32 %v1382_v38, %v1299_v17 }
 0x221   : > { %v1465_v9 = vadd.f32 %v1464_v58, %v1383_v62 }
 0x223   : > { %1498 = vst [vmem:[%s2203_s10 + $0xf8] sm:$0xff] %v1465_v9 }
 0x224   : > { %1661 = shalt.err (!%p1658_p3)
}
 0x225   : > { %s1698_s6 = smov 256   ;;  %s1699_s7 = smov 16  }
 0x226   : > { %1593 = dma.vmem_to_hbm [thread:$0]  (%p1758_p5), %s1514_s24, 4096, %s1516_s25, %s1500_s16, %s1698_s6, %s1698_s6, %s1699_s7  }
 0x227 PF: > { %p1599_p4 = scmp.ge.s32.totalorder %s1696_s15, 2  ;;  %s1530_s8 = sand.u32 1, %s1684_s12  }
 0x228   : > { %s1531_s9 = scalar_lea.sflag [#allocation3], %s1530_s8 }
 0x229   : > { %p1596_p7 = pnand %p1599_p4, %p1762_p6 }
 0x22b   : > { %p1597_p8 = pneg %p1596_p7 }
 0x22d   : > { %1679 = dma.done.wait (%p1597_p8), %s1531_s9, 4096  }
 0x22e   : > { %1681 = vsyncadd (%p1597_p8), %s1531_s9, 4294963200  ;;  %p13_p9 = scmp.ge.s32.totalorder %s1745_s18, 4   ;;  %s2457_s12 = smov %s1688_s13 }
 0x22f   : > { %s2458_s13 = smov %s1692_s14  ;;  %s2459_s14 = smov %s1756_s21 }
 0x230   : > { %s2460_s15 = smov %s1745_s18  ;;  %15 = sbr.rel (!%p13_p9) target bundleno = 3 (0x3), region = 67 }
 0x235   :  { %1537 = vsyncpa [#allocation3], 1 }
 0x236   :  { %1539 = vsyncpa [#allocation3 + $0x1], 1 }

</bundles_post_ra>
